<compile_context>
chip_gen: v6e
topology: v6e:2x2x1
jax: 0.10.0
libtpu: 0.0.40
codegen_flags: <defaults>
</compile_context>

<pallas_src>
from functools import partial

import jax
import jax.numpy as jnp
from jax.experimental import pallas as pl
from jax.experimental.pallas import tpu as pltpu

N_STATES = 33
N_ACTIONS = 4
N_ATOMS = 51
N_HIDDEN = 300

# Lane-aligned (padded) widths.
IN_PAD = 64    # 33 + 4 = 37 -> 64  (single fused layer-1 dot)
H1_PAD = 384   # 300 -> 384
H2_PAD = 256   # 200 -> 256
H3_PAD = 128   # 100 -> 128
OUT_PAD = 128  # 51  -> 128

_SELU_ALPHA = 1.6732632423543772848170429916717
_SELU_SCALE = 1.0507009873554804934193349852946
_NEG_BIG = -1e30  # bias for padded logit lanes -> exp() == 0 in the softmax


def _selu(x):
    # exp only ever sees x <= 0, so no transient inf for large activations.
    # (exp(min(x,0)) - 1 rather than expm1 keeps the Mosaic lowering simple;
    #  the cancellation's absolute error is ~1e-7, well inside tolerance.)
    return _SELU_SCALE * (jnp.maximum(x, 0.0)
                          + _SELU_ALPHA * (jnp.exp(jnp.minimum(x, 0.0)) - 1.0))


def _round_up(x, m):
    return ((x + m - 1) // m) * m


def critic_kernel(x_ref,
                  w1_ref, b1_ref,
                  w2_ref, b2_ref,
                  w3_ref, b3_ref,
                  w4_ref, b4_ref,
                  o_ref):
    # x_ref is already bf16, padded to IN_PAD lanes (padding lanes are zero),
    # so layer 1 is a single MXU pass-group instead of two.
    h = _selu(jnp.dot(x_ref[...], w1_ref[...],
                      preferred_element_type=jnp.float32) + b1_ref[...])    # [TB,384]
    h = _selu(jnp.dot(h.astype(jnp.bfloat16), w2_ref[...],
                      preferred_element_type=jnp.float32) + b2_ref[...])    # [TB,256]
    h = _selu(jnp.dot(h.astype(jnp.bfloat16), w3_ref[...],
                      preferred_element_type=jnp.float32) + b3_ref[...])    # [TB,128]
    logits = jnp.dot(h.astype(jnp.bfloat16), w4_ref[...],
                     preferred_element_type=jnp.float32) + b4_ref[...]      # [TB,128]

    # log_softmax over the atom axis; padded lanes have a -1e30 bias so they
    # never win the max and their exp() contribution is exactly zero.
    m = jnp.max(logits, axis=1, keepdims=True)
    z = logits - m
    lse = jnp.log(jnp.sum(jnp.exp(z), axis=1, keepdims=True))
    o_ref[...] = z - lse


def make_critic_params(seed=0,
                       n_states=N_STATES, n_actions=N_ACTIONS,
                       n_atoms=N_ATOMS, n_hidden=N_HIDDEN):
    """Deterministic f32 params mimicking nn.Linear's U(-1/sqrt(fan_in)) init.
    Weights stored [in, out]; biases [1, out]."""
    dims = [n_states + n_actions, n_hidden, 2 * n_hidden // 3,
            n_hidden // 3, n_atoms]
    key = jax.random.PRNGKey(seed)
    params = []
    for i in range(4):
        fan_in, fan_out = dims[i], dims[i + 1]
        key, kw, kb = jax.random.split(key, 3)
        bound = 1.0 / jnp.sqrt(jnp.float32(fan_in))
        w = jax.random.uniform(kw, (fan_in, fan_out), jnp.float32, -bound, bound)
        b = jax.random.uniform(kb, (1, fan_out), jnp.float32, -bound, bound)
        params.append((w, b))
    return params


def _pad2d(x, rows, cols, fill=0.0):
    r, c = x.shape
    return jnp.pad(x, ((0, rows - r), (0, cols - c)), constant_values=fill)


def pack_critic_params(params):
    """Pad to lane-aligned widths, fuse W1 over the concat axis, cast weights
    to bf16 (biases stay f32)."""
    (w1, b1), (w2, b2), (w3, b3), (w4, b4) = params

    w1p = _pad2d(w1, IN_PAD, H1_PAD).astype(jnp.bfloat16)   # fused [37->64, 300->384]
    b1p = _pad2d(b1, 1, H1_PAD).astype(jnp.float32)

    w2p = _pad2d(w2, H1_PAD, H2_PAD).astype(jnp.bfloat16)
    b2p = _pad2d(b2, 1, H2_PAD).astype(jnp.float32)

    w3p = _pad2d(w3, H2_PAD, H3_PAD).astype(jnp.bfloat16)
    b3p = _pad2d(b3, 1, H3_PAD).astype(jnp.float32)

    w4p = _pad2d(w4, H3_PAD, OUT_PAD).astype(jnp.bfloat16)
    # padded logit lanes get a huge negative bias -> exp() == 0 in the softmax
    b4p = _pad2d(b4, 1, OUT_PAD, fill=_NEG_BIG).astype(jnp.float32)

    return (w1p, b1p, w2p, b2p, w3p, b3p, w4p, b4p)


@partial(jax.jit, static_argnames=("block_rows",))
def critic_forward_padded(states, actions, kernel_params, *, block_rows=2048):
    """Runs the Pallas kernel; returns padded log-probs of shape
    [round_up(B, 8), 128].  The valid region is [:B, :51] — slice lazily at the
    consumer (a tied slice here would re-read/re-write the whole output)."""
    w1, b1, w2, b2, w3, b3, w4, b4 = kernel_params

    # Concat + zero-pad features to IN_PAD, pad batch to the sublane multiple,
    # and cast to bf16 once here (the kernel never re-packs inputs).  This is
    # ~150 B/row of HBM traffic — negligible vs. the MXU pass it saves.
    x = jnp.concatenate([states.astype(jnp.float32),
                         actions.astype(jnp.float32)], axis=1)        # [B, 37]
    batch, feat = x.shape
    batch_p = _round_up(batch, 8)
    x = jnp.pad(x, ((0, batch_p - batch), (0, IN_PAD - feat))).astype(jnp.bfloat16)

    # Batch tile: big enough to amortize the ~0.35 us/grid-step overhead,
    # multiple of 512, and >= 2 grid steps whenever the batch allows it so both
    # v7x TensorCores get work under dimension_semantics=("parallel",).
    if batch_p <= 512:
        tb = batch_p
    else:
        br = max(512, _round_up(block_rows, 512))
        tb = min(br, _round_up(pl.cdiv(batch_p, 2), 512))
    grid = (pl.cdiv(batch_p, tb),)

    # VMEM/step: ~7 KiB per batch row (double-buffered I/O tiles + f32
    # intermediates + bf16 casts) + ~0.7 MiB of resident weights; 2x headroom,
    # capped below v7x's 64 MiB physical VMEM (also lifts v5e's 16 MiB default).
    vmem_limit = int(min(64 * 2**20, max(32 * 2**20, 2 * (tb * 7 * 1024 + 2**20))))

    row_map = lambda i: (i, 0)     # batch-tiled activations / output
    const_map = lambda i: (0, 0)   # weights/biases: VMEM-resident across steps
    wspec = lambda arr: pl.BlockSpec(arr.shape, const_map)

    return pl.pallas_call(
        critic_kernel,
        out_shape=jax.ShapeDtypeStruct((batch_p, OUT_PAD), jnp.float32),
        grid=grid,
        in_specs=[
            pl.BlockSpec((tb, IN_PAD), row_map),
            wspec(w1), wspec(b1),
            wspec(w2), wspec(b2),
            wspec(w3), wspec(b3),
            wspec(w4), wspec(b4),
        ],
        out_specs=pl.BlockSpec((tb, OUT_PAD), row_map),
        compiler_params=pltpu.CompilerParams(
            dimension_semantics=("parallel",),   # megacore sharding on v7x
            vmem_limit_bytes=vmem_limit),
    )(x, w1, b1, w2, b2, w3, b3, w4, b4)


def critic_forward(states, actions, kernel_params, *, block_rows=2048,
                   n_atoms=N_ATOMS):
    """Exact PyTorch-module semantics: [B, 51] log-probs.  Performance-critical
    callers should use critic_forward_padded() and slice lazily instead."""
    out = critic_forward_padded(states, actions, kernel_params,
                                block_rows=block_rows)
    return out[:states.shape[0], :n_atoms]


def critic_reference(states, actions, params):
    """Pure-JAX f32 reference matching the PyTorch module."""
    x = jnp.concatenate([states, actions], axis=1).astype(jnp.float32)
    (w1, b1), (w2, b2), (w3, b3), (w4, b4) = params
    h = _selu(x @ w1 + b1)
    h = _selu(h @ w2 + b2)
    h = _selu(h @ w3 + b3)
    logits = h @ w4 + b4
    return jax.nn.log_softmax(logits, axis=1)


if __name__ == "__main__":
    params = make_critic_params(seed=0)           # f32 reference params
    kparams = pack_critic_params(params)          # padded bf16 kernel params

    key = jax.random.PRNGKey(0)
    # batch=8: single-block path; batch=1040: multi-step grid + ragged last
    # block (exercises the new >=2-step / megacore tiling).
    for batch in (8, 1040):
        key, k_s, k_a = jax.random.split(key, 3)
        states = jax.random.normal(k_s, (batch, N_STATES), jnp.float32)
        actions = jax.random.normal(k_a, (batch, N_ACTIONS), jnp.float32)

        out_padded = critic_forward_padded(states, actions, kparams)
        out_padded = jax.block_until_ready(out_padded)
        out = out_padded[:batch, :N_ATOMS]        # lazy consumer-side slice

        ref = critic_reference(states, actions, params)
        assert out.shape == (batch, N_ATOMS), out.shape
        # bf16 weights/activations in the kernel vs f32 reference -> relaxed tol.
        assert jnp.allclose(out, ref, atol=5e-2, rtol=5e-2), "mismatch vs reference"
        # log_softmax rows must exponentiate-sum to 1 regardless of precision.
        assert jnp.allclose(jnp.sum(jnp.exp(out), axis=1), 1.0, atol=1e-4)

    print("KERNEL_OK")
</pallas_src>

<mosaic_0001>
module attributes {stable_mosaic.version = 11 : i64} {
  func.func @critic_kernel(%arg0: i32, %arg1: memref<8x64xbf16, #tpu.memory_space<vmem>>, %arg2: memref<64x384xbf16, #tpu.memory_space<vmem>>, %arg3: memref<1x384xf32, #tpu.memory_space<vmem>>, %arg4: memref<384x256xbf16, #tpu.memory_space<vmem>>, %arg5: memref<1x256xf32, #tpu.memory_space<vmem>>, %arg6: memref<256x128xbf16, #tpu.memory_space<vmem>>, %arg7: memref<1x128xf32, #tpu.memory_space<vmem>>, %arg8: memref<128x128xbf16, #tpu.memory_space<vmem>>, %arg9: memref<1x128xf32, #tpu.memory_space<vmem>>, %arg10: memref<8x128xf32, #tpu.memory_space<vmem>>) attributes {dimension_semantics = [#tpu.dimension_semantics<parallel>], iteration_bounds = array<i64: 1>, scalar_prefetch = 0 : i64, scratch_operands = 0 : i64, tpu.core_type = #tpu.core_type<tc>, window_params = [{transform_indices = @transform_0, window_bounds = array<i64: 8, 64>}, {pipeline_mode = #tpu.pipeline_mode<synchronous>, transform_indices = @transform_1, window_bounds = array<i64: 64, 384>}, {pipeline_mode = #tpu.pipeline_mode<synchronous>, transform_indices = @transform_2, window_bounds = array<i64: 1, 384>}, {pipeline_mode = #tpu.pipeline_mode<synchronous>, transform_indices = @transform_3, window_bounds = array<i64: 384, 256>}, {pipeline_mode = #tpu.pipeline_mode<synchronous>, transform_indices = @transform_4, window_bounds = array<i64: 1, 256>}, {pipeline_mode = #tpu.pipeline_mode<synchronous>, transform_indices = @transform_5, window_bounds = array<i64: 256, 128>}, {pipeline_mode = #tpu.pipeline_mode<synchronous>, transform_indices = @transform_6, window_bounds = array<i64: 1, 128>}, {pipeline_mode = #tpu.pipeline_mode<synchronous>, transform_indices = @transform_7, window_bounds = array<i64: 128, 128>}, {pipeline_mode = #tpu.pipeline_mode<synchronous>, transform_indices = @transform_8, window_bounds = array<i64: 1, 128>}, {transform_indices = @transform_9, window_bounds = array<i64: 8, 128>}]} {
    %c0 = arith.constant 0 : index
    %c0_0 = arith.constant 0 : index
    %0 = vector.load %arg1[%c0, %c0_0] : memref<8x64xbf16, #tpu.memory_space<vmem>>, vector<8x64xbf16>
    %c0_1 = arith.constant 0 : index
    %c0_2 = arith.constant 0 : index
    %1 = vector.load %arg2[%c0_1, %c0_2] : memref<64x384xbf16, #tpu.memory_space<vmem>>, vector<64x384xbf16>
    %cst = arith.constant dense<0.000000e+00> : vector<8x384xf32>
    %2 = tpu.matmul %0, %1, %cst {dimension_numbers = #tpu.dot_dimension_numbers<[1], [0], [0], [1], [0, 0, 1, 1], [], []>} : vector<8x64xbf16>, vector<64x384xbf16>, vector<8x384xf32> -> vector<8x384xf32>
    %c0_3 = arith.constant 0 : index
    %c0_4 = arith.constant 0 : index
    %3 = vector.load %arg3[%c0_3, %c0_4] : memref<1x384xf32, #tpu.memory_space<vmem>>, vector<1x384xf32>
    %4 = vector.broadcast %3 : vector<1x384xf32> to vector<8x384xf32>
    %5 = arith.addf %2, %4 : vector<8x384xf32>
    %cst_5 = arith.constant 0.000000e+00 : f32
    %6 = vector.broadcast %cst_5 : f32 to vector<8x384xf32>
    %7 = arith.maximumf %5, %6 : vector<8x384xf32>
    %cst_6 = arith.constant 0.000000e+00 : f32
    %8 = vector.broadcast %cst_6 : f32 to vector<8x384xf32>
    %9 = arith.minimumf %5, %8 : vector<8x384xf32>
    %10 = math.exp %9 : vector<8x384xf32>
    %cst_7 = arith.constant 1.000000e+00 : f32
    %11 = vector.broadcast %cst_7 : f32 to vector<8x384xf32>
    %12 = arith.subf %10, %11 : vector<8x384xf32>
    %cst_8 = arith.constant 1.67326319 : f32
    %13 = vector.broadcast %cst_8 : f32 to vector<8x384xf32>
    %14 = arith.mulf %13, %12 : vector<8x384xf32>
    %15 = arith.addf %7, %14 : vector<8x384xf32>
    %cst_9 = arith.constant 1.05070102 : f32
    %16 = vector.broadcast %cst_9 : f32 to vector<8x384xf32>
    %17 = arith.mulf %16, %15 : vector<8x384xf32>
    %18 = arith.truncf %17 : vector<8x384xf32> to vector<8x384xbf16>
    %c0_10 = arith.constant 0 : index
    %c0_11 = arith.constant 0 : index
    %19 = vector.load %arg4[%c0_10, %c0_11] : memref<384x256xbf16, #tpu.memory_space<vmem>>, vector<384x256xbf16>
    %cst_12 = arith.constant dense<0.000000e+00> : vector<8x256xf32>
    %20 = tpu.matmul %18, %19, %cst_12 {dimension_numbers = #tpu.dot_dimension_numbers<[1], [0], [0], [1], [0, 0, 1, 1], [], []>} : vector<8x384xbf16>, vector<384x256xbf16>, vector<8x256xf32> -> vector<8x256xf32>
    %c0_13 = arith.constant 0 : index
    %c0_14 = arith.constant 0 : index
    %21 = vector.load %arg5[%c0_13, %c0_14] : memref<1x256xf32, #tpu.memory_space<vmem>>, vector<1x256xf32>
    %22 = vector.broadcast %21 : vector<1x256xf32> to vector<8x256xf32>
    %23 = arith.addf %20, %22 : vector<8x256xf32>
    %cst_15 = arith.constant 0.000000e+00 : f32
    %24 = vector.broadcast %cst_15 : f32 to vector<8x256xf32>
    %25 = arith.maximumf %23, %24 : vector<8x256xf32>
    %cst_16 = arith.constant 0.000000e+00 : f32
    %26 = vector.broadcast %cst_16 : f32 to vector<8x256xf32>
    %27 = arith.minimumf %23, %26 : vector<8x256xf32>
    %28 = math.exp %27 : vector<8x256xf32>
    %cst_17 = arith.constant 1.000000e+00 : f32
    %29 = vector.broadcast %cst_17 : f32 to vector<8x256xf32>
    %30 = arith.subf %28, %29 : vector<8x256xf32>
    %cst_18 = arith.constant 1.67326319 : f32
    %31 = vector.broadcast %cst_18 : f32 to vector<8x256xf32>
    %32 = arith.mulf %31, %30 : vector<8x256xf32>
    %33 = arith.addf %25, %32 : vector<8x256xf32>
    %cst_19 = arith.constant 1.05070102 : f32
    %34 = vector.broadcast %cst_19 : f32 to vector<8x256xf32>
    %35 = arith.mulf %34, %33 : vector<8x256xf32>
    %36 = arith.truncf %35 : vector<8x256xf32> to vector<8x256xbf16>
    %c0_20 = arith.constant 0 : index
    %c0_21 = arith.constant 0 : index
    %37 = vector.load %arg6[%c0_20, %c0_21] : memref<256x128xbf16, #tpu.memory_space<vmem>>, vector<256x128xbf16>
    %cst_22 = arith.constant dense<0.000000e+00> : vector<8x128xf32>
    %38 = tpu.matmul %36, %37, %cst_22 {dimension_numbers = #tpu.dot_dimension_numbers<[1], [0], [0], [1], [0, 0, 1, 1], [], []>} : vector<8x256xbf16>, vector<256x128xbf16>, vector<8x128xf32> -> vector<8x128xf32>
    %c0_23 = arith.constant 0 : index
    %c0_24 = arith.constant 0 : index
    %39 = vector.load %arg7[%c0_23, %c0_24] : memref<1x128xf32, #tpu.memory_space<vmem>>, vector<1x128xf32>
    %40 = vector.broadcast %39 : vector<1x128xf32> to vector<8x128xf32>
    %41 = arith.addf %38, %40 : vector<8x128xf32>
    %cst_25 = arith.constant 0.000000e+00 : f32
    %42 = vector.broadcast %cst_25 : f32 to vector<8x128xf32>
    %43 = arith.maximumf %41, %42 : vector<8x128xf32>
    %cst_26 = arith.constant 0.000000e+00 : f32
    %44 = vector.broadcast %cst_26 : f32 to vector<8x128xf32>
    %45 = arith.minimumf %41, %44 : vector<8x128xf32>
    %46 = math.exp %45 : vector<8x128xf32>
    %cst_27 = arith.constant 1.000000e+00 : f32
    %47 = vector.broadcast %cst_27 : f32 to vector<8x128xf32>
    %48 = arith.subf %46, %47 : vector<8x128xf32>
    %cst_28 = arith.constant 1.67326319 : f32
    %49 = vector.broadcast %cst_28 : f32 to vector<8x128xf32>
    %50 = arith.mulf %49, %48 : vector<8x128xf32>
    %51 = arith.addf %43, %50 : vector<8x128xf32>
    %cst_29 = arith.constant 1.05070102 : f32
    %52 = vector.broadcast %cst_29 : f32 to vector<8x128xf32>
    %53 = arith.mulf %52, %51 : vector<8x128xf32>
    %54 = arith.truncf %53 : vector<8x128xf32> to vector<8x128xbf16>
    %c0_30 = arith.constant 0 : index
    %c0_31 = arith.constant 0 : index
    %55 = vector.load %arg8[%c0_30, %c0_31] : memref<128x128xbf16, #tpu.memory_space<vmem>>, vector<128x128xbf16>
    %cst_32 = arith.constant dense<0.000000e+00> : vector<8x128xf32>
    %56 = tpu.matmul %54, %55, %cst_32 {dimension_numbers = #tpu.dot_dimension_numbers<[1], [0], [0], [1], [0, 0, 1, 1], [], []>} : vector<8x128xbf16>, vector<128x128xbf16>, vector<8x128xf32> -> vector<8x128xf32>
    %c0_33 = arith.constant 0 : index
    %c0_34 = arith.constant 0 : index
    %57 = vector.load %arg9[%c0_33, %c0_34] : memref<1x128xf32, #tpu.memory_space<vmem>>, vector<1x128xf32>
    %58 = vector.broadcast %57 : vector<1x128xf32> to vector<8x128xf32>
    %59 = arith.addf %56, %58 : vector<8x128xf32>
    %cst_35 = arith.constant dense<0xFF800000> : vector<8xf32>
    %60 = vector.multi_reduction <maximumf>, %59, %cst_35 [1] : vector<8x128xf32> to vector<8xf32>
    %61 = vector.shape_cast %60 : vector<8xf32> to vector<8x1xf32>
    %62 = vector.broadcast %61 : vector<8x1xf32> to vector<8x128xf32>
    %63 = arith.subf %59, %62 : vector<8x128xf32>
    %64 = math.exp %63 : vector<8x128xf32>
    %cst_36 = arith.constant dense<0.000000e+00> : vector<8xf32>
    %65 = vector.multi_reduction <add>, %64, %cst_36 [1] : vector<8x128xf32> to vector<8xf32>
    %66 = vector.shape_cast %65 : vector<8xf32> to vector<8x1xf32>
    %67 = math.log %66 : vector<8x1xf32>
    %68 = vector.broadcast %67 : vector<8x1xf32> to vector<8x128xf32>
    %69 = arith.subf %63, %68 : vector<8x128xf32>
    %c0_37 = arith.constant 0 : index
    %c0_38 = arith.constant 0 : index
    %70 = vector.load %arg10[%c0_37, %c0_38] : memref<8x128xf32, #tpu.memory_space<vmem>>, vector<8x128xf32>
    tpu.vector_store %arg10[%c0_37, %c0_38], %69 {strides = array<i32>} : memref<8x128xf32, #tpu.memory_space<vmem>>, vector<8x128xf32>,
    return
  }
  func.func @transform_0(%arg0: i32) -> (i32, i32) {
    %c0_i32 = arith.constant 0 : i32
    %c0_i32_0 = arith.constant 0 : i32
    return %arg0, %c0_i32 : i32, i32
  }
  func.func @transform_1(%arg0: i32) -> (i32, i32) {
    %c0_i32 = arith.constant 0 : i32
    %c0_i32_0 = arith.constant 0 : i32
    %c0_i32_1 = arith.constant 0 : i32
    return %c0_i32, %c0_i32_0 : i32, i32
  }
  func.func @transform_2(%arg0: i32) -> (i32, i32) {
    %c0_i32 = arith.constant 0 : i32
    %c0_i32_0 = arith.constant 0 : i32
    %c0_i32_1 = arith.constant 0 : i32
    return %c0_i32, %c0_i32_0 : i32, i32
  }
  func.func @transform_3(%arg0: i32) -> (i32, i32) {
    %c0_i32 = arith.constant 0 : i32
    %c0_i32_0 = arith.constant 0 : i32
    %c0_i32_1 = arith.constant 0 : i32
    return %c0_i32, %c0_i32_0 : i32, i32
  }
  func.func @transform_4(%arg0: i32) -> (i32, i32) {
    %c0_i32 = arith.constant 0 : i32
    %c0_i32_0 = arith.constant 0 : i32
    %c0_i32_1 = arith.constant 0 : i32
    return %c0_i32, %c0_i32_0 : i32, i32
  }
  func.func @transform_5(%arg0: i32) -> (i32, i32) {
    %c0_i32 = arith.constant 0 : i32
    %c0_i32_0 = arith.constant 0 : i32
    %c0_i32_1 = arith.constant 0 : i32
    return %c0_i32, %c0_i32_0 : i32, i32
  }
  func.func @transform_6(%arg0: i32) -> (i32, i32) {
    %c0_i32 = arith.constant 0 : i32
    %c0_i32_0 = arith.constant 0 : i32
    %c0_i32_1 = arith.constant 0 : i32
    return %c0_i32, %c0_i32_0 : i32, i32
  }
  func.func @transform_7(%arg0: i32) -> (i32, i32) {
    %c0_i32 = arith.constant 0 : i32
    %c0_i32_0 = arith.constant 0 : i32
    %c0_i32_1 = arith.constant 0 : i32
    return %c0_i32, %c0_i32_0 : i32, i32
  }
  func.func @transform_8(%arg0: i32) -> (i32, i32) {
    %c0_i32 = arith.constant 0 : i32
    %c0_i32_0 = arith.constant 0 : i32
    %c0_i32_1 = arith.constant 0 : i32
    return %c0_i32, %c0_i32_0 : i32, i32
  }
  func.func @transform_9(%arg0: i32) -> (i32, i32) {
    %c0_i32 = arith.constant 0 : i32
    %c0_i32_0 = arith.constant 0 : i32
    return %arg0, %c0_i32 : i32, i32
  }
}

</mosaic_0001>

<bundles_post_ra>
// kernel: critic_forward_padded.1
= control target key start
LH: loop header
LB: loop body
LE: loop exit
PB: predicated region body
PF: predicated region fallthrough
CT: control target
= control target key end

     0   :  { %14 = vsyncpa [#allocation3], 0  ;;  %s1561_s0 = inlined_call_operand.vmem [shape: bf16[8,64], index: 0, kind: input, shape index: {}]   ;;  %s1562_s1 = inlined_call_operand.hbm [shape: bf16[64,384], index: 1, kind: input, shape index: {}]   ;;  %s1563_s2 = inlined_call_operand.vmem [shape: f32[1,384], index: 2, kind: input, shape index: {}]   ;;  %s1564_s3 = inlined_call_operand.hbm [shape: bf16[384,256], index: 3, kind: input, shape index: {}]   ;;  %s1565_s4 = inlined_call_operand.vmem [shape: f32[1,256], index: 4, kind: input, shape index: {}]   ;;  %s1566_s5 = inlined_call_operand.hbm [shape: bf16[256,128], index: 5, kind: input, shape index: {}]   ;;  %s1567_s6 = inlined_call_operand.vmem [shape: f32[1,128], index: 6, kind: input, shape index: {}]   ;;  %s1568_s7 = inlined_call_operand.hbm [shape: bf16[128,128], index: 7, kind: input, shape index: {}]   ;;  %s1569_s8 = inlined_call_operand.vmem [shape: f32[1,128], index: 8, kind: input, shape index: {}]   ;;  %s1570_s9 = inlined_call_operand.hbm [shape: f32[8,128], index: 9, kind: output, shape index: {}]  }
   0x1   :  { %15 = vsyncpa [#allocation6], 0 }
   0x2   :  { %16 = vsyncpa [#allocation9], 0 }
   0x3   :  { %17 = vsyncpa [#allocation4], 0  ;;  %s1434_s30 = smov [#allocation5]  }
   0x4   :  { %s39_s10 = sshll.u32 %s1434_s30, 4  ;;  %s40_s10 = int_to_ptr.vmem [resolvable:$true] %s39_s10 }
   0x5   :  { %s1334_s11 = scalar_lea.vmem %s40_s10, 6144  ;;  %p1339_p1 = scmp.lt.s32.totalorder %s40_s10, %s40_s10 }
   0x6   :  { %p1335_p0 = scmp.ne.s32.totalorder %s40_s10, %s1334_s11  ;;  %p1340_p2 = scmp.lt.s32.totalorder %s1334_s11, %s1334_s11 }
   0x8   :  { %p1341_p3 = por %p1340_p2, %p1339_p1 }
   0xa   :  { %p1342_p4 = pnand %p1341_p3, %p1335_p0 }
   0xc   :  { %1345 = shalt.err (!%p1342_p4)
}
   0xd   :  { %s1435_s12 = smov 128   ;;  %s1436_s13 = smov 8  }
   0xe   :  { %45 = dma.hbm_to_vmem [thread:$0]  %s1564_s3, 6144, %s40_s10, [#allocation6], %s1435_s12, %s1435_s12, %s1436_s13  }
   0xf   :  { %s1437_s16 = smov [#allocation2]  }
  0x10   :  { %s25_s17 = sshll.u32 %s1437_s16, 4  ;;  %s26_s17 = int_to_ptr.vmem [resolvable:$true] %s25_s17 }
  0x11   :  { %s1354_s18 = scalar_lea.vmem %s26_s17, 1536  ;;  %p1359_p6 = scmp.lt.s32.totalorder %s26_s17, %s26_s17 }
  0x12   :  { %p1355_p5 = scmp.ne.s32.totalorder %s26_s17, %s1354_s18  ;;  %p1360_p7 = scmp.lt.s32.totalorder %s1354_s18, %s1354_s18 }
  0x14   :  { %p1361_p8 = por %p1360_p7, %p1359_p6 }
  0x16   :  { %p1362_p9 = pnand %p1361_p8, %p1355_p5 }
  0x18   :  { %1365 = shalt.err (!%p1362_p9)
}
  0x19   :  { %s1438_s19 = smov 192   ;;  %s1439_s20 = smov 12  }
  0x1a   :  { %31 = dma.hbm_to_vmem [thread:$0]  %s1562_s1, 1536, %s26_s17, [#allocation3], %s1438_s19, %s1438_s19, %s1439_s20  }
  0x1b   :  { %s1440_s23 = smov [#allocation7]  }
  0x1c   :  { %s53_s24 = sshll.u32 %s1440_s23, 4  ;;  %s54_s24 = int_to_ptr.vmem [resolvable:$true] %s53_s24 }
  0x1d   :  { %s1374_s3 = scalar_lea.vmem %s54_s24, 2048  ;;  %p1379_p11 = scmp.lt.s32.totalorder %s54_s24, %s54_s24 }
  0x1e   :  { %p1375_p10 = scmp.ne.s32.totalorder %s54_s24, %s1374_s3  ;;  %p1380_p12 = scmp.lt.s32.totalorder %s1374_s3, %s1374_s3 }
  0x20   :  { %p1381_p13 = por %p1380_p12, %p1379_p11 }
  0x22   :  { %p1382_p0 = pnand %p1381_p13, %p1375_p10 }
  0x24   :  { %1385 = shalt.err (!%p1382_p0)
}
  0x25   :  { %s1441_s25 = smov 64   ;;  %s1442_s26 = smov 4  }
  0x26   :  { %59 = dma.hbm_to_vmem [thread:$0]  %s1566_s5, 2048, %s54_s24, [#allocation6], %s1441_s25, %s1441_s25, %s1442_s26  }
  0x27   :  { %s1443_s29 = smov [#allocation8]  }
  0x28   :  { %s67_s30 = sshll.u32 %s1443_s29, 4  ;;  %s68_s30 = int_to_ptr.vmem [resolvable:$true] %s67_s30 }
  0x29   :  { %s1394_s1 = scalar_lea.vmem %s68_s30, 1024  ;;  %p1399_p2 = scmp.lt.s32.totalorder %s68_s30, %s68_s30 }
  0x2a   :  { %p1395_p1 = scmp.ne.s32.totalorder %s68_s30, %s1394_s1  ;;  %p1400_p3 = scmp.lt.s32.totalorder %s1394_s1, %s1394_s1 }
  0x2c   :  { %p1401_p4 = por %p1400_p3, %p1399_p2 }
  0x2e   :  { %p1402_p5 = pnand %p1401_p4, %p1395_p1 }
  0x30   :  { %1405 = shalt.err (!%p1402_p5)
}
  0x31   :  { %73 = dma.hbm_to_vmem [thread:$0]  %s1568_s7, 1024, %s68_s30, [#allocation9], %s1441_s25, %s1441_s25, %s1442_s26  }
  0x32   :  { %1426 = dma.done.wait [#allocation3], 1536  }
  0x33   :  { %1427 = vsyncadd [#allocation3], 4294965760 }
  0x34   :  { %1428 = dma.done.wait [#allocation6], 8192  }
  0x35   :  { %1429 = vsyncadd [#allocation6], 4294959104 }
  0x36   :  { %1430 = dma.done.wait [#allocation9], 1024  }
  0x37   :  { %1431 = vsyncadd [#allocation9], 4294966272  ;;  %v1444_v0 = vmov 0   ;;  %v1198_v1 = vld [vmem:[#allocation2 + $0x4c] ss:$12 sps:$4 sm:$0xff]   ;;  %vm187_vm0 = vcmask 523264   ;;  %v108_v63 = vlaneseq }
  0x38   :  { %223 = vmatprep.mubr.bf16.mxu1 %v1444_v0  ;;  %v1200_v2 = vld [vmem:[#allocation2 + $0x48] ss:$12 sps:$4 sm:$0xff]   ;;  %199 = vmatprep.subr.bf16.mxu1 %v1198_v1  ;;  %v1203_v4 = vld [vmem:[#allocation2 + $0x30] ss:$12 sps:$4 sm:$0xff]   ;;  %v1206_v6 = vld [vmem:[#allocation2 + $0x18] ss:$12 sps:$4 sm:$0xff]  }
  0x39   :  { %v1201_v3 = vld [vmem:[#allocation2 + $0x34] ss:$12 sps:$4 sm:$0xff]   ;;  %200 = vmatpush1.bf16.msra.mxu1 %v1200_v2  ;;  %v1204_v5 = vld [vmem:[#allocation2 + $0x1c] ss:$12 sps:$4 sm:$0xff]   ;;  %v1207_v7 = vld [vmem:[#allocation2 + $0x4] ss:$12 sps:$4 sm:$0xff]  }
  0x3a   :  { %201 = vmatprep.subr.bf16.mxu1 %v1201_v3  ;;  %v1209_v8 = vld [vmem:[#allocation2] ss:$12 sps:$4 sm:$0xff]   ;;  %v1214_v9 = vld [vmem:[#allocation5 + $0x74] ss:$8 sps:$4 sm:$0xff]   ;;  %v1216_v10 = vld [vmem:[#allocation5 + $0x70] ss:$8 sps:$4 sm:$0xff]  }
  0x3b   :  { %v1217_v11 = vld [vmem:[#allocation5 + $0x64] ss:$8 sps:$4 sm:$0xff]   ;;  %599 = vmatprep.subr.bf16.mxu0 %v1214_v9  ;;  %v1219_v12 = vld [vmem:[#allocation5 + $0x60] ss:$8 sps:$4 sm:$0xff]   ;;  %v1220_v14 = vld [vmem:[#allocation5 + $0x54] ss:$8 sps:$4 sm:$0xff]  }
  0x3c   :  { %600 = vmatpush1.bf16.msra.mxu0 %v1216_v10  ;;  %v89_v13 = vld [vmem:[%s1561_s0] sm:$0xf]  ;;  %v1210_v15 = vld [vmem:[#allocation2 + $0x50] ss:$12 sps:$4 sm:$0xff]   ;;  %v1445_v16 = vmov 0.0   ;;  %vm1446_vm1 = vmmov 0  }
  0x3d   :  { %202 = vmatpush1.bf16.msra.mxu1 %v1203_v4  ;;  %601 = vmatprep.subr.bf16.mxu0 %v1217_v11  ;;  %v1222_v17 = vld [vmem:[#allocation5 + $0x50] ss:$8 sps:$4 sm:$0xff]   ;;  %v1223_v18 = vld [vmem:[#allocation5 + $0x44] ss:$8 sps:$4 sm:$0xff]   ;;  %v1225_v20 = vld [vmem:[#allocation5 + $0x40] ss:$8 sps:$4 sm:$0xff]  }
  0x3e   :  { %203 = vmatprep.subr.bf16.mxu1 %v1204_v5  ;;  %v1211_v19 = vld [vmem:[#allocation2 + $0x38] ss:$12 sps:$4 sm:$0xff]   ;;  %v1226_v21 = vld [vmem:[#allocation5 + $0x34] ss:$8 sps:$4 sm:$0xff]   ;;  %v1212_v22 = vld [vmem:[#allocation2 + $0x20] ss:$12 sps:$4 sm:$0xff]  }
  0x3f   :  { %v1228_v23 = vld [vmem:[#allocation5 + $0x30] ss:$8 sps:$4 sm:$0xff]   ;;  %v1229_v24 = vld [vmem:[#allocation5 + $0x24] ss:$8 sps:$4 sm:$0xff]   ;;  %v1213_v25 = vld [vmem:[#allocation2 + $0x8] ss:$12 sps:$4 sm:$0xff]  }
  0x40   :  { %602 = vmatpush1.bf16.msra.mxu0 %v1219_v12  ;;  %v1231_v26 = vld [vmem:[#allocation5 + $0x20] ss:$8 sps:$4 sm:$0xff]   ;;  %v1232_v27 = vld [vmem:[#allocation5 + $0x14] ss:$8 sps:$4 sm:$0xff]   ;;  %v1234_v28 = vld [vmem:[#allocation5 + $0x10] ss:$8 sps:$4 sm:$0xff]  }
  0x41   :  { %204 = vmatpush1.bf16.msra.mxu1 %v1206_v6  ;;  %603 = vmatprep.subr.bf16.mxu0 %v1220_v14  ;;  %v1235_v29 = vld [vmem:[#allocation5 + $0x4] ss:$8 sps:$4 sm:$0xff]   ;;  %v1237_v30 = vld [vmem:[#allocation5] ss:$8 sps:$4 sm:$0xff]   ;;  %v1238_v31 = vld [vmem:[#allocation5 + $0xf4] ss:$8 sps:$4 sm:$0xff]  }
  0x42   :  { %205 = vmatprep.subr.bf16.mxu1 %v1207_v7  ;;  %v1240_v32 = vld [vmem:[#allocation5 + $0xf0] ss:$8 sps:$4 sm:$0xff]   ;;  %v1241_v33 = vld [vmem:[#allocation5 + $0xe4] ss:$8 sps:$4 sm:$0xff]   ;;  %v1243_v34 = vld [vmem:[#allocation5 + $0xe0] ss:$8 sps:$4 sm:$0xff]  }
  0x43   :  { %v1244_v35 = vld [vmem:[#allocation5 + $0xd4] ss:$8 sps:$4 sm:$0xff]   ;;  %v1246_v36 = vld [vmem:[#allocation5 + $0xd0] ss:$8 sps:$4 sm:$0xff]   ;;  %v1247_v37 = vld [vmem:[#allocation5 + $0xc4] ss:$8 sps:$4 sm:$0xff]  }
  0x44   :  { %604 = vmatpush1.bf16.msra.mxu0 %v1222_v17  ;;  %v1249_v38 = vld [vmem:[#allocation5 + $0xc0] ss:$8 sps:$4 sm:$0xff]   ;;  %v1252_v39 = vld [vmem:[#allocation5 + $0x174] ss:$8 sps:$4 sm:$0xff]   ;;  %v1250_v40 = vld [vmem:[#allocation5 + $0x170] ss:$8 sps:$4 sm:$0xff]  }
  0x45   :  { %206 = vmatpush1.bf16.msra.mxu1 %v1209_v8  ;;  %605 = vmatprep.subr.bf16.mxu0 %v1223_v18  ;;  %v1253_v41 = vld [vmem:[#allocation5 + $0xb4] ss:$8 sps:$4 sm:$0xff]   ;;  %v1255_v42 = vld [vmem:[#allocation5 + $0xb0] ss:$8 sps:$4 sm:$0xff]   ;;  %v1258_v43 = vld [vmem:[#allocation5 + $0x164] ss:$8 sps:$4 sm:$0xff]  }
  0x46   :  { %1152 = vmatprep.subr.bf16.mxu1 %v1445_v16  ;;  %v1256_v44 = vld [vmem:[#allocation5 + $0x160] ss:$8 sps:$4 sm:$0xff]   ;;  %v1259_v45 = vld [vmem:[#allocation5 + $0xa4] ss:$8 sps:$4 sm:$0xff]   ;;  %v1264_v47 = vld [vmem:[#allocation5 + $0x154] ss:$8 sps:$4 sm:$0xff]  }
  0x47   :  { %v1261_v46 = vld [vmem:[#allocation5 + $0xa0] ss:$8 sps:$4 sm:$0xff]   ;;  %v1262_v48 = vld [vmem:[#allocation5 + $0x150] ss:$8 sps:$4 sm:$0xff]   ;;  %v1265_v49 = vld [vmem:[#allocation5 + $0x94] ss:$8 sps:$4 sm:$0xff]  }
  0x48   :  { %1034 = vmatmul.mubr.msk.bf16.vlgmr.msra.gmra.mxu1 %vm187_vm0, %v89_v13  ;;  %606 = vmatpush1.bf16.msra.mxu0 %v1225_v20  ;;  %v1267_v50 = vld [vmem:[#allocation5 + $0x90] ss:$8 sps:$4 sm:$0xff]   ;;  %v1270_v51 = vld [vmem:[#allocation5 + $0x144] ss:$8 sps:$4 sm:$0xff]   ;;  %v1268_v52 = vld [vmem:[#allocation5 + $0x140] ss:$8 sps:$4 sm:$0xff]  }
  0x49   :  { %1153 = vmatpush3.bf16.msra.mxu1 %v1210_v15  ;;  %1160 = vmatprep.mubr.msk.bf16.mxu1 %vm1446_vm1, %v1445_v16  ;;  %v1271_v53 = vld [vmem:[#allocation5 + $0x84] ss:$8 sps:$4 sm:$0xff]   ;;  %v1273_v54 = vld [vmem:[#allocation5 + $0x80] ss:$8 sps:$4 sm:$0xff]   ;;  %v1276_v55 = vld [vmem:[#allocation5 + $0x134] ss:$8 sps:$4 sm:$0xff]  }
  0x4a   :  { %1154 = vmatprep.subr.bf16.mxu1 %v1445_v16  ;;  %607 = vmatprep.subr.bf16.mxu0 %v1226_v21  ;;  %v1274_v56 = vld [vmem:[#allocation5 + $0x130] ss:$8 sps:$4 sm:$0xff]   ;;  %v1279_v57 = vld [vmem:[#allocation5 + $0x124] ss:$8 sps:$4 sm:$0xff]   ;;  %v1277_v58 = vld [vmem:[#allocation5 + $0x120] ss:$8 sps:$4 sm:$0xff]  }
  0x4b   :  { %v1282_v59 = vld [vmem:[#allocation5 + $0x114] ss:$8 sps:$4 sm:$0xff]   ;;  %v1280_v60 = vld [vmem:[#allocation5 + $0x110] ss:$8 sps:$4 sm:$0xff]   ;;  %v1285_v61 = vld [vmem:[#allocation5 + $0x104] ss:$8 sps:$4 sm:$0xff]  }
  0x4c   :  { %608 = vmatpush1.bf16.msra.mxu0 %v1228_v23  ;;  %v1283_v62 = vld [vmem:[#allocation5 + $0x100] ss:$8 sps:$4 sm:$0xff]  }
  0x4d   :  { %1155 = vmatpush3.bf16.msra.mxu1 %v1211_v19  ;;  %609 = vmatprep.subr.bf16.mxu0 %v1229_v24  ;;  %v106_v2 = vld [vmem:[%s1563_s2] sm:$0x7] }
  0x4e   :  { %1156 = vmatprep.subr.bf16.mxu1 %v1445_v16 }
  0x50   :  { %610 = vmatpush1.bf16.msra.mxu0 %v1231_v26 }
  0x51   :  { %1157 = vmatpush3.bf16.msra.mxu1 %v1212_v22  ;;  %611 = vmatprep.subr.bf16.mxu0 %v1232_v27 }
  0x52   :  { %1158 = vmatprep.subr.bf16.mxu1 %v1445_v16 }
  0x54   :  { %612 = vmatpush1.bf16.msra.mxu0 %v1234_v28 }
  0x55   :  { %1159 = vmatpush3.bf16.msra.mxu1 %v1213_v25  ;;  %613 = vmatprep.subr.bf16.mxu0 %v1235_v29 }
  0x56   :  { %640 = vmatprep.subr.bf16.mxu1 %v1252_v39 }
  0x58   :  { %1161 = vmatmul.mubr.msk.bf16.vlgmr.msra.gmra.mxu1 %vm187_vm0, %v89_v13  ;;  %614 = vmatpush1.bf16.msra.mxu0 %v1237_v30 }
  0x59   :  { %672 = vmatprep.mubr.bf16.mxu1 %v1444_v0  ;;  %615 = vmatprep.subr.bf16.mxu0 %v1238_v31  ;;  %v1524_v0 = vshrl.u32 %v108_v63, 7 }
  0x5a   :  { %641 = vmatpush1.bf16.msra.mxu1 %v1250_v40 }
  0x5b   :  { %642 = vmatprep.subr.bf16.mxu1 %v1258_v43  ;;  %v110_v1 = vsub.s32 0, %v1524_v0  ;;  %v114_v3 = vsub.s32 1, %v1524_v0  ;;  %v118_v17 = vsub.s32 2, %v1524_v0 }
  0x5c   :  { %616 = vmatpush2.bf16.msra.mxu0 %v1240_v32 }
  0x5d   :  { %617 = vmatprep.subr.bf16.mxu0 %v1241_v33  ;;  %v111_v4 = vrot.slane %v106_v2, %v110_v1  ;;  %v115_v5 = vrot.slane %v106_v2, %v114_v3  ;;  %v119_v18 = vrot.slane %v106_v2, %v118_v17 }
  0x5e   :  { %643 = vmatpush1.bf16.msra.mxu1 %v1256_v44 }
  0x5f   :  { %644 = vmatprep.subr.bf16.mxu1 %v1264_v47  ;;  %v1286_v47 = vld [vmem:[#allocation7 + $0x78] sm:$0xff]  }
  0x60   :  { %618 = vmatpush2.bf16.msra.mxu0 %v1243_v34 }
  0x61   :  { %619 = vmatprep.subr.bf16.mxu0 %v1244_v35 }
  0x62   :  { %645 = vmatpush1.bf16.msra.mxu1 %v1262_v48  ;;  %v1287_v48 = vld [vmem:[#allocation7 + $0x38] sm:$0xff]  }
  0x63   :  { %646 = vmatprep.subr.bf16.mxu1 %v1270_v51  ;;  %v1290_v51 = vld [vmem:[#allocation7 + $0x68] sm:$0xff]  }
  0x64   :  { %620 = vmatpush2.bf16.msra.mxu0 %v1246_v36 }
  0x65   :  { %621 = vmatprep.subr.bf16.mxu0 %v1247_v37 }
  0x66   :  { %647 = vmatpush1.bf16.msra.mxu1 %v1268_v52  ;;  %v1291_v52 = vld [vmem:[#allocation7 + $0x28] sm:$0xff]  }
  0x67   :  { %648 = vmatprep.subr.bf16.mxu1 %v1276_v55  ;;  %v1294_v55 = vld [vmem:[#allocation7 + $0x58] sm:$0xff]  }
  0x68   :  { %622 = vmatpush2.bf16.msra.mxu0 %v1249_v38 }
  0x69   :  { %623 = vmatprep.subr.bf16.mxu0 %v1253_v41 }
  0x6a   :  { %649 = vmatpush1.bf16.msra.mxu1 %v1274_v56  ;;  %v1295_v56 = vld [vmem:[#allocation7 + $0x18] sm:$0xff]  }
  0x6b   :  { %650 = vmatprep.subr.bf16.mxu1 %v1279_v57  ;;  %v1296_v57 = vld [vmem:[#allocation7 + $0x50] sm:$0xff]  }
  0x6c   :  { %624 = vmatpush2.bf16.msra.mxu0 %v1255_v42 }
  0x6d   :  { %625 = vmatprep.subr.bf16.mxu0 %v1259_v45 }
  0x6e   :  { %651 = vmatpush1.bf16.msra.mxu1 %v1277_v58  ;;  %v1297_v58 = vld [vmem:[#allocation7 + $0x10] sm:$0xff]  }
  0x6f   :  { %652 = vmatprep.subr.bf16.mxu1 %v1282_v59  ;;  %v1298_v59 = vld [vmem:[#allocation7 + $0x48] sm:$0xff]  }
  0x70   :  { %626 = vmatpush2.bf16.msra.mxu0 %v1261_v46 }
  0x71   :  { %627 = vmatprep.subr.bf16.mxu0 %v1265_v49  ;;  %v1288_v49 = vld [vmem:[#allocation7 + $0x70] sm:$0xff]  }
  0x72   :  { %653 = vmatpush1.bf16.msra.mxu1 %v1280_v60  ;;  %v1299_v60 = vld [vmem:[#allocation7 + $0x8] sm:$0xff]  }
  0x73   :  { %654 = vmatprep.subr.bf16.mxu1 %v1285_v61  ;;  %v1300_v61 = vld [vmem:[#allocation7 + $0x40] sm:$0xff]  }
  0x74   :  { %628 = vmatpush2.bf16.msra.mxu0 %v1267_v50  ;;  %v1289_v50 = vld [vmem:[#allocation7 + $0x30] sm:$0xff]  }
  0x75   :  { %629 = vmatprep.subr.bf16.mxu0 %v1271_v53  ;;  %v1292_v53 = vld [vmem:[#allocation7 + $0x60] sm:$0xff]  }
  0x76   :  { %655 = vmatpush1.bf16.msra.mxu1 %v1283_v62  ;;  %v1301_v62 = vld [vmem:[#allocation7] sm:$0xff]  }
  0x77   :  { %1121 = vmatprep.subr.bf16.mxu1 %v1286_v47 }
  0x78   :  { %630 = vmatpush2.bf16.msra.mxu0 %v1273_v54  ;;  %v1293_v54 = vld [vmem:[#allocation7 + $0x20] sm:$0xff]  }
  0x79   :  { %1164 = vmatprep.subr.bf16.mxu0 %v1445_v16 }
 0x108   :  { %v225_v6 = vpop.f32.mrf.mxu1 }
 0x109   :  { %v226_v7 = vadd.f32 %v225_v6, %v111_v4 }
 0x10a   :  { %v227_v8 = vpop.f32.mrf.mxu1 }
 0x10b   :  { %v275_v9 = vmin.f32 %v226_v7, 0.0  ;;  %v228_v10 = vadd.f32 %v227_v8, %v115_v5  ;;  %v272_v29 = vmax.f32 %v226_v7, 0.0  ;;  %v347_v5 = vld [vmem:[%s1565_s4] sm:$0x3] }
 0x10c   :  { %v229_v11 = vpop.f32.mrf.mxu1  ;;  %v352_v7 = vrot.slane %v347_v5, %v110_v1  ;;  %v356_v8 = vrot.slane %v347_v5, %v114_v3 }
 0x10d   :  { %v278_v12 = vmul.f32 1.442695, %v275_v9  ;;  %v276_v13 = vmin.f32 %v228_v10, 0.0  ;;  %v273_v33 = vmax.f32 %v228_v10, 0.0 }
 0x10e   :  { %v230_v14 = vpop.f32.mrf.mxu1 }
 0x10f   :  { %1310 = vpow2.f32 %v278_v12  ;;  %v280_v15 = vmul.f32 1.442695, %v276_v13 }
 0x111   :  { %1312 = vpow2.f32 %v280_v15 }
 0x118   :  { %v266_v19 = vpop.f32.mrf.mxu1 }
 0x119   :  { %v267_v20 = vadd.f32 %v266_v19, %v119_v18 }
 0x11a   :  { %v1162_v21 = vpop.f32.mrf.mxu1 }
 0x11b   :  { %v277_v22 = vmin.f32 %v267_v20, 0.0  ;;  %v274_v42 = vmax.f32 %v267_v20, 0.0 }
 0x11c   :  { %v1311_v23 = vpop.eup %1310  ;;  %v269_v24 = vpop.f32.mrf.mxu1 }
 0x11d   :  { %v1036_v25 = vadd.f32 -1.0, %v1311_v23  ;;  %v282_v26 = vmul.f32 1.442695, %v277_v22 }
 0x11e   :  { %v1313_v27 = vpop.eup %1312  ;;  %v1163_v28 = vpop.f32.mrf.mxu1 }
 0x11f   :  { %v287_v30 = vmul.f32 1.6732632, %v1036_v25  ;;  %1314 = vpow2.f32 %v282_v26  ;;  %v1037_v31 = vadd.f32 -1.0, %v1313_v27 }
 0x121   :  { %v290_v32 = vadd.f32 %v287_v30, %v272_v29  ;;  %v288_v34 = vmul.f32 1.6732632, %v1037_v31 }
 0x123   :  { %v291_v35 = vadd.f32 %v288_v34, %v273_v33  ;;  %v293_v36 = vmul.f32 1.050701, %v290_v32  ;;  %v1302_v33 = vld [vmem:[#allocation8 + $0x38] sm:$0xff]   ;;  %v1303_v34 = vld [vmem:[#allocation8 + $0x30] sm:$0xff]  }
 0x125   :  { %v294_v37 = vmul.f32 1.050701, %v291_v35  ;;  %v296_v39 = vpack.c.bf16 %v293_v36, %v293_v36  ;;  %v1304_v35 = vld [vmem:[#allocation8 + $0x28] sm:$0xff]   ;;  %v1305_v36 = vld [vmem:[#allocation8 + $0x20] sm:$0xff]  }
 0x127   :  { %v297_v38 = vpack.c.bf16 %v294_v37, %v294_v37  ;;  %v1306_v37 = vld [vmem:[#allocation8 + $0x18] sm:$0xff]  }
 0x129   :  { %631 = vmatprep.mubr.bf16.mxu0 %v297_v38  ;;  %v1307_v38 = vld [vmem:[#allocation8 + $0x10] sm:$0xff]  }
 0x12a   :  { %632 = vmatmul.mubr.bf16.vlgmr.msra.gmra.mxu0 %v296_v39  ;;  %v1308_v39 = vld [vmem:[#allocation8 + $0x8] sm:$0xff]  }
 0x12b   :  { %1180 = vmatprep.mubr.msk.bf16.mxu0 %vm1446_vm1, %v1445_v16  ;;  %1165 = vmatpush3.bf16.msra.mxu0 %v1302_v33 }
 0x12c   :  { %v1315_v40 = vpop.eup %1314  ;;  %1166 = vmatprep.subr.bf16.mxu0 %v1445_v16 }
 0x12d   :  { %v1038_v41 = vadd.f32 -1.0, %v1315_v40  ;;  %v1309_v40 = vld [vmem:[#allocation8] sm:$0xff]  }
 0x12f   :  { %v289_v43 = vmul.f32 1.6732632, %v1038_v41  ;;  %1167 = vmatpush3.bf16.msra.mxu0 %v1303_v34 }
 0x130   :  { %1168 = vmatprep.subr.bf16.mxu0 %v1445_v16 }
 0x131   :  { %v292_v44 = vadd.f32 %v289_v43, %v274_v42  ;;  %v1089_v42 = vld [vmem:[%s1567_s6] ss:$0 sm:$0xff]  ;;  %s1447_s6 = smov [#allocation10]  }
 0x132   :  { %s1011_s17 = sshll.u32 %s1447_s6, 4  ;;  %s1012_s17 = int_to_ptr.vmem [resolvable:$true] %s1011_s17 }
 0x133   :  { %v295_v45 = vmul.f32 1.050701, %v292_v44  ;;  %1169 = vmatpush3.bf16.msra.mxu0 %v1304_v35  ;;  %p1411_p7 = scmp.lt.s32.totalorder %s1012_s17, %s1012_s17 }
 0x134   :  { %1170 = vmatprep.subr.bf16.mxu0 %v1445_v16 }
 0x135   :  { %v298_v46 = vpack.c.bf16 %v295_v45, %v295_v45 }
 0x137   :  { %673 = vmatmul.mubr.bf16.vlgmr.msra.gmra.mxu1 %v298_v46  ;;  %1171 = vmatpush3.bf16.msra.mxu0 %v1305_v36 }
 0x138   :  { %1122 = vmatpush3.bf16.msra.mxu1 %v1287_v48  ;;  %1172 = vmatprep.subr.bf16.mxu0 %v1445_v16 }
 0x139   :  { %1123 = vmatprep.subr.bf16.mxu1 %v1288_v49 }
 0x13b   :  { %1173 = vmatpush3.bf16.msra.mxu0 %v1306_v37 }
 0x13c   :  { %1124 = vmatpush3.bf16.msra.mxu1 %v1289_v50  ;;  %1174 = vmatprep.subr.bf16.mxu0 %v1445_v16 }
 0x13d   :  { %1125 = vmatprep.subr.bf16.mxu1 %v1290_v51 }
 0x13f   :  { %1175 = vmatpush3.bf16.msra.mxu0 %v1307_v38 }
 0x140   :  { %1126 = vmatpush3.bf16.msra.mxu1 %v1291_v52  ;;  %1176 = vmatprep.subr.bf16.mxu0 %v1445_v16 }
 0x141   :  { %1127 = vmatprep.subr.bf16.mxu1 %v1292_v53 }
 0x143   :  { %1177 = vmatpush3.bf16.msra.mxu0 %v1308_v39 }
 0x144   :  { %1128 = vmatpush3.bf16.msra.mxu1 %v1293_v54  ;;  %1178 = vmatprep.subr.bf16.mxu0 %v1445_v16 }
 0x145   :  { %1129 = vmatprep.subr.bf16.mxu1 %v1294_v55 }
 0x147   :  { %1179 = vmatpush3.bf16.msra.mxu0 %v1309_v40 }
 0x148   :  { %1130 = vmatpush3.bf16.msra.mxu1 %v1295_v56  ;;  %v1107_v56 = vld [vmem:[%s1569_s8] ss:$0 sm:$0xff]  ;;  %s1406_s8 = scalar_lea.vmem %s1012_s17, 128 }
 0x149   :  { %1131 = vmatprep.subr.bf16.mxu1 %v1296_v57  ;;  %p1407_p6 = scmp.ne.s32.totalorder %s1012_s17, %s1406_s8  ;;  %p1412_p8 = scmp.lt.s32.totalorder %s1406_s8, %s1406_s8 }
 0x14b   :  { %p1413_p9 = por %p1412_p8, %p1411_p7 }
 0x14c   :  { %1132 = vmatpush3.bf16.msra.mxu1 %v1297_v58 }
 0x14d   :  { %1133 = vmatprep.subr.bf16.mxu1 %v1298_v59  ;;  %p1414_p10 = pnand %p1413_p9, %p1407_p6 }
 0x150   :  { %1134 = vmatpush3.bf16.msra.mxu1 %v1299_v60 }
 0x151   :  { %1135 = vmatprep.subr.bf16.mxu1 %v1300_v61 }
 0x154   :  { %1136 = vmatpush3.bf16.msra.mxu1 %v1301_v62 }
 0x1ea   :  { %v633_v63 = vpop.f32.mrf.mxu0 }
 0x1eb   :  { %v634_v9 = vadd.f32 %v633_v63, %v352_v7 }
 0x1ec   :  { %v635_v2 = vpop.f32.mrf.mxu0 }
 0x1ed   :  { %v636_v11 = vadd.f32 %v635_v2, %v356_v8 }
 0x1ee   :  { %v637_v4 = vpop.f32.mrf.mxu0 }
 0x1f0   :  { %v638_v6 = vpop.f32.mrf.mxu0 }
 0x1f7   :  { %v674_v10 = vpop.f32.mrf.mxu1 }
 0x1f8   :  { %v675_v12 = vadd.f32 %v674_v10, %v634_v9 }
 0x1f9   :  { %v676_v13 = vpop.f32.mrf.mxu1 }
 0x1fa   :  { %v683_v14 = vmin.f32 %v675_v12, 0.0  ;;  %v677_v15 = vadd.f32 %v676_v13, %v636_v11  ;;  %v681_v24 = vmax.f32 %v675_v12, 0.0 }
 0x1fb   :  { %v678_v17 = vpop.f32.mrf.mxu1 }
 0x1fc   :  { %v685_v18 = vmul.f32 1.442695, %v683_v14  ;;  %v684_v19 = vmin.f32 %v677_v15, 0.0  ;;  %v682_v26 = vmax.f32 %v677_v15, 0.0 }
 0x1fd   :  { %v679_v20 = vpop.f32.mrf.mxu1 }
 0x1fe   :  { %1316 = vpow2.f32 %v685_v18  ;;  %v687_v21 = vmul.f32 1.442695, %v684_v19 }
 0x200   :  { %1318 = vpow2.f32 %v687_v21 }
 0x20b   :  { %v1317_v22 = vpop.eup %1316 }
 0x20c   :  { %v1087_v23 = vadd.f32 -1.0, %v1317_v22 }
 0x20d   :  { %v1319_v1 = vpop.eup %1318 }
 0x20e   :  { %v691_v0 = vmul.f32 1.6732632, %v1087_v23  ;;  %v1088_v3 = vadd.f32 -1.0, %v1319_v1 }
 0x210   :  { %v693_v25 = vadd.f32 %v691_v0, %v681_v24  ;;  %v692_v27 = vmul.f32 1.6732632, %v1088_v3 }
 0x212   :  { %v694_v28 = vadd.f32 %v692_v27, %v682_v26  ;;  %v695_v29 = vmul.f32 1.050701, %v693_v25 }
 0x214   :  { %v696_v30 = vmul.f32 1.050701, %v694_v28  ;;  %v697_v32 = vpack.c.bf16 %v695_v29, %v695_v29 }
 0x216   :  { %v698_v31 = vpack.c.bf16 %v696_v30, %v696_v30 }
 0x218   :  { %866 = vmatprep.mubr.bf16.mxu1 %v698_v31 }
 0x219   :  { %867 = vmatmul.mubr.bf16.vlgmr.msra.gmra.mxu1 %v697_v32 }
 0x2d9   :  { %v1137_v41 = vpop.f32.mrf.mxu1 }
 0x2db   :  { %v1138_v43 = vpop.f32.mrf.mxu1 }
 0x2dc   :  { %v1139_v44 = vadd.f32 %v1138_v43, %v1137_v41 }
 0x2dd   :  { %v1140_v45 = vpop.f32.mrf.mxu1 }
 0x2de   :  { %v869_v46 = vadd.f32 %v1139_v44, %v1089_v42 }
 0x2df   :  { %v1141_v47 = vpop.f32.mrf.mxu1 }
 0x2e0   :  { %v875_v48 = vmin.f32 %v869_v46, 0.0  ;;  %v874_v52 = vmax.f32 %v869_v46, 0.0 }
 0x2e2   :  { %v876_v49 = vmul.f32 1.442695, %v875_v48 }
 0x2e4   :  { %1320 = vpow2.f32 %v876_v49 }
 0x2f1   :  { %v1321_v50 = vpop.eup %1320 }
 0x2f2   :  { %v1106_v51 = vadd.f32 -1.0, %v1321_v50 }
 0x2f4   :  { %v879_v53 = vmul.f32 1.6732632, %v1106_v51 }
 0x2f6   :  { %v880_v16 = vadd.f32 %v879_v53, %v874_v52 }
 0x2f8   :  { %v881_v54 = vmul.f32 1.050701, %v880_v16 }
 0x2fa   :  { %v882_v55 = vpack.c.bf16 %v881_v54, %v881_v54 }
 0x2fc   :  { %1181 = vmatmul.mubr.bf16.vlgmr.msra.gmra.mxu0 %v882_v55 }
 0x3bc   :  { %v988_v57 = vpop.f32.mrf.mxu0 }
 0x3bd   :  { %v989_v58 = vadd.f32 %v1107_v56, %v988_v57 }
 0x3be   :  { %v1182_v59 = vpop.f32.mrf.mxu0 }
 0x3bf   :  { %994 = vmax.xlane.f32.xlu0 %v989_v58 }
 0x3c0   :  { %v991_v60 = vpop.f32.mrf.mxu0 }
 0x3c2   :  { %v1183_v61 = vpop.f32.mrf.mxu0 }
 0x448   :  { %v995_v62 = vpop.xlane.xlu0 %994 }
 0x449   :  { %v996_v63 = vsub.f32 %v989_v58, %v995_v62 }
 0x44b   :  { %v997_v2 = vmul.f32 1.442695, %v996_v63 }
 0x44d   :  { %1322 = vpow2.f32 %v997_v2 }
 0x45a   :  { %v1323_v4 = vpop.eup %1322 }
 0x45b   :  { %999 = vadd.xlane.f32.xlu0 %v1323_v4 }
 0x4e4   :  { %v1000_v5 = vpop.xlane.xlu0 %999 }
 0x4e5   :  { %1324 = vlog2.f32 %v1000_v5 }
 0x4f2   :  { %v1325_v6 = vpop.eup %1324 }
 0x4f3   :  { %v1002_v7 = vmul.f32 0.6931472, %v1325_v6 }
 0x4f5   :  { %v1003_v8 = vsub.f32 %v996_v63, %v1002_v7 }
 0x4f7   :  { %1004 = vst [vmem:[#allocation10] sm:$0xff] %v1003_v8 }
 0x4f8   :  { %1417 = shalt.err (!%p1414_p10)
}
 0x4f9   :  { %1014 = dma.vmem_to_hbm [thread:$0]  %s1012_s17, 128, %s1570_s9, [#allocation4]  }
 0x4fa   :  { %1432 = dma.done.wait [#allocation4], 128  }
 0x4fb   :  { %1433 = vsyncadd [#allocation4], 4294967168 }
 0x4fc   :  { %1018 = vsyncpa [#allocation3], 1 }
 0x4fd   :  { %1019 = vsyncpa [#allocation6], 1 }
 0x4fe   :  { %1020 = vsyncpa [#allocation9], 1 }
 0x4ff   :  { %1021 = vsyncpa [#allocation4], 1 }

</bundles_post_ra>
